<compile_context>
chip_gen: v6e
topology: v6e:2x2x1
jax: 0.10.0
libtpu: 0.0.40
codegen_flags: <defaults>
</compile_context>

<pallas_src>
import functools

import jax
import jax.numpy as jnp
from jax import lax
from jax.experimental import pallas as pl
from jax.experimental.pallas import tpu as pltpu


def _ofg_warp_kernel(flow_ref, x_ref, o_ref, *, C, H, W, TP, Bb):
    """One grid step == Bb batch elements x one TP-wide pixel tile.

    flow_ref: (Bb, 2, TP)   displacement field (row 0: dh, row 1: dw)
    x_ref:    (Bb, C*H, W)  image (NCHW with leading dims flattened)
    o_ref:    (Bb, C, TP)   warped image, channels on sublanes, pixels on lanes
    """
    tile = pl.program_id(1)
    # Absolute flattened pixel indices covered by this tile.
    p = tile * TP + lax.broadcasted_iota(jnp.int32, (1, TP), 1)      # (1, TP)
    if (W & (W - 1)) == 0:                       # power-of-two fast path
        shift = W.bit_length() - 1
        base_h = (p >> shift).astype(jnp.float32)
        base_w = (p & (W - 1)).astype(jnp.float32)
    else:
        base_h = (p // W).astype(jnp.float32)
        base_w = (p % W).astype(jnp.float32)

    j_iota = lax.broadcasted_iota(jnp.int32, (W, TP), 0)
    i_iota = lax.broadcasted_iota(jnp.int32, (H, TP), 0)

    for b in range(Bb):                          # Bb is static -> unrolled
        flow_b = flow_ref[b].astype(jnp.float32)                     # (2, TP)
        src_h = flow_b[0:1, :] + base_h                              # (1, TP)
        src_w = flow_b[1:2, :] + base_w                              # (1, TP)

        h0f = jnp.floor(src_h)
        w0f = jnp.floor(src_w)
        th = src_h - h0f
        tw = src_w - w0f
        h0 = h0f.astype(jnp.int32)
        w0 = w0f.astype(jnp.int32)
        h1 = h0 + 1
        w1 = w0 + 1

        # Two-tap one-hot interpolation matrices via nested selects.  An
        # out-of-range corner matches no iota row and contributes zero
        # (grid_sample zero-padding semantics).
        a_w = jnp.where(j_iota == w0, 1.0 - tw,
                        jnp.where(j_iota == w1, tw, 0.0))            # (W, TP)
        a_h = jnp.where(i_iota == h0, 1.0 - th,
                        jnp.where(i_iota == h1, th, 0.0))            # (H, TP)

        # Horizontal taps: one MXU matmul, lane-dense N = TP output.
        x_b = x_ref[b]                                               # (C*H, W)
        if x_b.dtype == jnp.bfloat16:
            a_w_mx = a_w.astype(jnp.bfloat16)    # bf16-native MXU path
        else:
            a_w_mx = a_w
            x_b = x_b.astype(jnp.float32)
        t = jnp.dot(x_b, a_w_mx,
                    preferred_element_type=jnp.float32)              # (C*H, TP)

        # Vertical taps: per-channel weighted sublane reduction, one store.
        out_b = jnp.sum(t.reshape(C, H, TP) * a_h[None, :, :], axis=1)
        o_ref[b] = out_b.astype(o_ref.dtype)                         # (C, TP)


def _choose_tiling(B, H, W, max_tp=512):
    """Pixel-tile width (multiple of 128 when possible) and batch block."""
    HW = H * W
    cands = [t for t in range(128, min(max_tp, HW) + 1, 128) if HW % t == 0]
    TP = max(cands) if cands else HW
    num_tiles = HW // TP
    Bb = 1
    if num_tiles == 1 and B >= 4:
        # Amortize per-grid-step overhead on tiny images while keeping at
        # least 2 grid steps (v7x has 2 TensorCores).
        for cand in range(B // 2, 0, -1):
            if B % cand == 0:
                Bb = cand
                break
    return TP, Bb


def ofg_forward(x_nchw, flow_nchw):
    """OFG.forward: returns (x_warped (B,C,H,W), flow (B,2,H,W))."""
    B, C, H, W = x_nchw.shape
    HW = H * W
    TP, Bb = _choose_tiling(B, H, W)

    # Plain reshapes only -- no wrapper-side transposes or extra HBM tensors.
    flow_k = flow_nchw.reshape(B, 2, HW)
    x_k = x_nchw.reshape(B, C * H, W)

    kernel = functools.partial(_ofg_warp_kernel, C=C, H=H, W=W, TP=TP, Bb=Bb)

    x_itemsize = jnp.dtype(x_nchw.dtype).itemsize
    flow_itemsize = jnp.dtype(flow_nchw.dtype).itemsize

    # Generous per-step VMEM estimate (double-buffered I/O tiles + resident
    # image block + one-hot / matmul intermediates), clamped to stay safely
    # under v7x's 64 MiB physical VMEM.
    per_step = (
        2 * Bb * 2 * TP * 4
        + 2 * Bb * C * TP * x_itemsize
        + 2 * Bb * C * H * W * x_itemsize
        + 4 * C * H * TP * 4
        + 2 * (H + W) * TP * 4
    )
    vmem_limit = int(min(48 << 20, max(16 << 20, 2 * per_step)))

    cost = pl.CostEstimate(
        flops=2 * B * C * H * W * HW + 2 * B * C * H * HW,
        transcendentals=0,
        bytes_accessed=(x_nchw.size * x_itemsize
                        + flow_nchw.size * flow_itemsize
                        + B * C * HW * x_itemsize),
    )

    out = pl.pallas_call(
        kernel,
        out_shape=jax.ShapeDtypeStruct((B, C, HW), x_nchw.dtype),
        grid_spec=pltpu.PrefetchScalarGridSpec(
            num_scalar_prefetch=0,
            grid=(B // Bb, HW // TP),
            in_specs=[
                pl.BlockSpec((Bb, 2, TP), lambda b, t: (b, 0, t)),
                # Image block index is constant along the pixel-tile axis:
                # it stays resident in VMEM instead of being re-DMA'd.
                pl.BlockSpec((Bb, C * H, W), lambda b, t: (b, 0, 0)),
            ],
            out_specs=pl.BlockSpec((Bb, C, TP), lambda b, t: (b, 0, t)),
        ),
        compiler_params=pltpu.CompilerParams(
            dimension_semantics=("parallel", "parallel"),
            vmem_limit_bytes=vmem_limit,
        ),
        cost_estimate=cost,
    )(flow_k, x_k)

    x_warped = out.reshape(B, C, H, W)
    return x_warped, flow_nchw


def _ref_warp(x, flow):
    """Pure-JAX reference of the bilinear spatial transformer (NCHW)."""
    B, C, H, W = x.shape
    ii = jnp.arange(H, dtype=jnp.float32)[None, :, None]
    jj = jnp.arange(W, dtype=jnp.float32)[None, None, :]
    src_h = ii + flow[:, 0]
    src_w = jj + flow[:, 1]
    h0 = jnp.floor(src_h)
    w0 = jnp.floor(src_w)
    th = src_h - h0
    tw = src_w - w0
    x_flat = x.reshape(B, C, H * W)

    def gather(hc, wc, wgt):
        valid = ((hc >= 0) & (hc < H) & (wc >= 0) & (wc < W)).astype(x.dtype)
        hcc = jnp.clip(hc, 0, H - 1).astype(jnp.int32)
        wcc = jnp.clip(wc, 0, W - 1).astype(jnp.int32)
        flat = (hcc * W + wcc).reshape(B, 1, H * W)
        vals = jnp.take_along_axis(x_flat, jnp.broadcast_to(flat, (B, C, H * W)),
                                   axis=2).reshape(B, C, H, W)
        return vals * (wgt * valid)[:, None]

    return (gather(h0, w0, (1 - th) * (1 - tw))
            + gather(h0, w0 + 1, (1 - th) * tw)
            + gather(h0 + 1, w0, th * (1 - tw))
            + gather(h0 + 1, w0 + 1, th * tw))


if __name__ == "__main__":
    key = jax.random.PRNGKey(0)
    kx, kf = jax.random.split(key)

    B, C, H, W = 2, 4, 16, 16          # img_size = (16, 16)
    x = jax.random.normal(kx, (B, C, H, W), dtype=jnp.float32)
    # Deterministic "nn.Parameter(initial_flow)" -- small random displacements.
    flow = 1.5 * jax.random.normal(kf, (B, 2, H, W), dtype=jnp.float32)

    x_warped, flow_out = jax.jit(ofg_forward)(x, flow)
    jax.block_until_ready((x_warped, flow_out))

    ref = _ref_warp(x, flow)
    assert x_warped.shape == (B, C, H, W)
    assert flow_out.shape == (B, 2, H, W)
    assert jnp.allclose(x_warped, ref, atol=1e-4, rtol=1e-4)
    assert jnp.array_equal(flow_out, flow)

    print("KERNEL_OK")
</pallas_src>

<mosaic_0001>
module attributes {stable_mosaic.version = 11 : i64} {
  func.func @_ofg_warp_kernel(%arg0: i32, %arg1: i32, %arg2: memref<1x2x256xf32, #tpu.memory_space<vmem>>, %arg3: memref<1x64x16xf32, #tpu.memory_space<vmem>>, %arg4: memref<1x4x256xf32, #tpu.memory_space<vmem>>) attributes {dimension_semantics = [#tpu.dimension_semantics<parallel>, #tpu.dimension_semantics<parallel>], iteration_bounds = array<i64: 2, 1>, scalar_prefetch = 0 : i64, scratch_operands = 0 : i64, tpu.core_type = #tpu.core_type<tc>, window_params = [{transform_indices = @transform_0, window_bounds = array<i64: 1, 2, 256>}, {transform_indices = @transform_1, window_bounds = array<i64: 1, 64, 16>}, {transform_indices = @transform_2, window_bounds = array<i64: 1, 4, 256>}]} {
    %c256_i32 = arith.constant 256 : i32
    %0 = arith.muli %arg1, %c256_i32 : i32
    %1 = tpu.iota {dimensions = array<i32: 1>} : vector<1x256xi32>
    %2 = vector.broadcast %0 : i32 to vector<1x256xi32>
    %3 = arith.addi %2, %1 : vector<1x256xi32>
    %c4_i32 = arith.constant 4 : i32
    %4 = vector.broadcast %c4_i32 : i32 to vector<1x256xi32>
    %5 = arith.shrsi %3, %4 : vector<1x256xi32>
    %6 = arith.sitofp %5 : vector<1x256xi32> to vector<1x256xf32>
    %c15_i32 = arith.constant 15 : i32
    %7 = vector.broadcast %c15_i32 : i32 to vector<1x256xi32>
    %8 = arith.andi %3, %7 : vector<1x256xi32>
    %9 = arith.sitofp %8 : vector<1x256xi32> to vector<1x256xf32>
    %10 = tpu.iota {dimensions = array<i32: 0>} : vector<16x256xi32>
    %11 = tpu.iota {dimensions = array<i32: 0>} : vector<16x256xi32>
    %c0 = arith.constant 0 : index
    %c0_0 = arith.constant 0 : index
    %c0_1 = arith.constant 0 : index
    %12 = vector.load %arg2[%c0, %c0_0, %c0_1] : memref<1x2x256xf32, #tpu.memory_space<vmem>>, vector<1x2x256xf32>
    %13 = vector.shape_cast %12 : vector<1x2x256xf32> to vector<2x256xf32>
    %14 = vector.extract_strided_slice %13 {offsets = [0, 0], sizes = [1, 256], strides = [1, 1]} : vector<2x256xf32> to vector<1x256xf32>
    %15 = arith.addf %14, %6 : vector<1x256xf32>
    %16 = vector.extract_strided_slice %13 {offsets = [1, 0], sizes = [1, 256], strides = [1, 1]} : vector<2x256xf32> to vector<1x256xf32>
    %17 = arith.addf %16, %9 : vector<1x256xf32>
    %18 = math.floor %15 : vector<1x256xf32>
    %19 = math.floor %17 : vector<1x256xf32>
    %20 = arith.subf %15, %18 : vector<1x256xf32>
    %21 = arith.subf %17, %19 : vector<1x256xf32>
    %22 = arith.fptosi %18 : vector<1x256xf32> to vector<1x256xi32>
    %23 = arith.fptosi %19 : vector<1x256xf32> to vector<1x256xi32>
    %c1_i32 = arith.constant 1 : i32
    %24 = vector.broadcast %c1_i32 : i32 to vector<1x256xi32>
    %25 = arith.addi %22, %24 : vector<1x256xi32>
    %c1_i32_2 = arith.constant 1 : i32
    %26 = vector.broadcast %c1_i32_2 : i32 to vector<1x256xi32>
    %27 = arith.addi %23, %26 : vector<1x256xi32>
    %28 = vector.broadcast %23 : vector<1x256xi32> to vector<16x256xi32>
    %29 = arith.cmpi eq, %10, %28 : vector<16x256xi32>
    %cst = arith.constant 1.000000e+00 : f32
    %30 = vector.broadcast %cst : f32 to vector<1x256xf32>
    %31 = arith.subf %30, %21 : vector<1x256xf32>
    %32 = vector.broadcast %27 : vector<1x256xi32> to vector<16x256xi32>
    %33 = arith.cmpi eq, %10, %32 : vector<16x256xi32>
    %cst_3 = arith.constant 0.000000e+00 : f32
    %34 = vector.shape_cast %21 : vector<1x256xf32> to vector<1x256xf32>
    %35 = vector.broadcast %34 : vector<1x256xf32> to vector<16x256xf32>
    %36 = vector.broadcast %cst_3 : f32 to vector<16x256xf32>
    %37 = arith.select %33, %35, %36 : vector<16x256xi1>, vector<16x256xf32>
    %38 = vector.shape_cast %31 : vector<1x256xf32> to vector<1x256xf32>
    %39 = vector.broadcast %38 : vector<1x256xf32> to vector<16x256xf32>
    %40 = arith.select %29, %39, %37 : vector<16x256xi1>, vector<16x256xf32>
    %41 = vector.broadcast %22 : vector<1x256xi32> to vector<16x256xi32>
    %42 = arith.cmpi eq, %11, %41 : vector<16x256xi32>
    %cst_4 = arith.constant 1.000000e+00 : f32
    %43 = vector.broadcast %cst_4 : f32 to vector<1x256xf32>
    %44 = arith.subf %43, %20 : vector<1x256xf32>
    %45 = vector.broadcast %25 : vector<1x256xi32> to vector<16x256xi32>
    %46 = arith.cmpi eq, %11, %45 : vector<16x256xi32>
    %cst_5 = arith.constant 0.000000e+00 : f32
    %47 = vector.shape_cast %20 : vector<1x256xf32> to vector<1x256xf32>
    %48 = vector.broadcast %47 : vector<1x256xf32> to vector<16x256xf32>
    %49 = vector.broadcast %cst_5 : f32 to vector<16x256xf32>
    %50 = arith.select %46, %48, %49 : vector<16x256xi1>, vector<16x256xf32>
    %51 = vector.shape_cast %44 : vector<1x256xf32> to vector<1x256xf32>
    %52 = vector.broadcast %51 : vector<1x256xf32> to vector<16x256xf32>
    %53 = arith.select %42, %52, %50 : vector<16x256xi1>, vector<16x256xf32>
    %c0_6 = arith.constant 0 : index
    %c0_7 = arith.constant 0 : index
    %c0_8 = arith.constant 0 : index
    %54 = vector.load %arg3[%c0_6, %c0_7, %c0_8] : memref<1x64x16xf32, #tpu.memory_space<vmem>>, vector<1x64x16xf32>
    %55 = vector.shape_cast %54 : vector<1x64x16xf32> to vector<64x16xf32>
    %cst_9 = arith.constant dense<0.000000e+00> : vector<64x256xf32>
    %56 = tpu.matmul %55, %40, %cst_9 {dimension_numbers = #tpu.dot_dimension_numbers<[1], [0], [0], [1], [0, 0, 1, 1], [], []>} : vector<64x16xf32>, vector<16x256xf32>, vector<64x256xf32> -> vector<64x256xf32>
    %57 = vector.shape_cast %56 : vector<64x256xf32> to vector<4x16x256xf32>
    %58 = vector.shape_cast %53 : vector<16x256xf32> to vector<1x16x256xf32>
    %59 = vector.broadcast %58 : vector<1x16x256xf32> to vector<4x16x256xf32>
    %60 = arith.mulf %57, %59 : vector<4x16x256xf32>
    %cst_10 = arith.constant dense<0.000000e+00> : vector<4x256xf32>
    %61 = vector.multi_reduction <add>, %60, %cst_10 [1] : vector<4x16x256xf32> to vector<4x256xf32>
    %c0_11 = arith.constant 0 : index
    %c0_12 = arith.constant 0 : index
    %c0_13 = arith.constant 0 : index
    %62 = vector.load %arg4[%c0_11, %c0_12, %c0_13] : memref<1x4x256xf32, #tpu.memory_space<vmem>>, vector<1x4x256xf32>
    %63 = vector.shape_cast %62 : vector<1x4x256xf32> to vector<4x256xf32>
    %64 = vector.shape_cast %61 : vector<4x256xf32> to vector<1x4x256xf32>
    tpu.vector_store %arg4[%c0_11, %c0_12, %c0_13], %64 {strides = array<i32>} : memref<1x4x256xf32, #tpu.memory_space<vmem>>, vector<1x4x256xf32>,
    return
  }
  func.func @transform_0(%arg0: i32, %arg1: i32) -> (i32, i32, i32) {
    %c0_i32 = arith.constant 0 : i32
    %c0_i32_0 = arith.constant 0 : i32
    return %arg0, %c0_i32, %arg1 : i32, i32, i32
  }
  func.func @transform_1(%arg0: i32, %arg1: i32) -> (i32, i32, i32) {
    %c0_i32 = arith.constant 0 : i32
    %c0_i32_0 = arith.constant 0 : i32
    %c0_i32_1 = arith.constant 0 : i32
    return %arg0, %c0_i32, %c0_i32_0 : i32, i32, i32
  }
  func.func @transform_2(%arg0: i32, %arg1: i32) -> (i32, i32, i32) {
    %c0_i32 = arith.constant 0 : i32
    %c0_i32_0 = arith.constant 0 : i32
    return %arg0, %c0_i32, %arg1 : i32, i32, i32
  }
}

</mosaic_0001>

<bundles_post_ra>
// kernel: ofg_forward.1
= control target key start
LH: loop header
LB: loop body
LE: loop exit
PB: predicated region body
PF: predicated region fallthrough
CT: control target
= control target key end

     0   :  { %7 = vsyncpa [#allocation3], 0  ;;  %s1158_s0 = inlined_call_operand.vmem [shape: f32[2,2,256], index: 0, kind: input, shape index: {}]   ;;  %s1159_s1 = inlined_call_operand.hbm [shape: f32[2,64,16], index: 1, kind: input, shape index: {}]   ;;  %s1160_s2 = inlined_call_operand.vmem [shape: f32[2,4,256], index: 2, kind: output, shape index: {}]  }
   0x1   :  { %9 = vsyncpa [#allocation3 + $0x1], 0  ;;  %s999_s9 = smov 0   ;;  %s1001_s10 = smov 0  }
   0x2   :  { %s1003_s11 = smov 0   ;;  %s1005_s12 = smov 0  }
   0x3   :  { %s1007_s13 = smov 0   ;;  %s1009_s14 = smov 0  }
   0x4 LB: > { %s806_s15 = sadd.s32 4294967295, %s977_s14   ;;  %s27_s16 = sadd.s32 1, %s973_s13  ;;  %s977_s14 = sphi %s1009_s14, %s15_s14   ;;  %s973_s13 = sphi %s1007_s13, %s1168_s13   ;;  %s969_s12 = sphi %s1005_s12, %s1167_s12   ;;  %s965_s11 = sphi %s1003_s11, %s1166_s11   ;;  %s961_s10 = sphi %s1001_s10, %s1165_s10   ;;  %s957_s9 = sphi %s999_s9, %s1164_s9  }
   0x5   : > { %p29_p0 = scmp.ge.s32.totalorder %s27_s16, 2  ;;  %s62_s17 = sadd.s32 1, %s965_s11 }
   0x6   : > { %p69_p1 = scmp.ne.s32.totalorder %s965_s11, %s961_s10  ;;  %p70_p2 = scmp.eq.s32.totalorder %s977_s14, 0 }
   0x7   : > { %s1170_s16 = smov (%p29_p0, %s27_s16), 0  ;;  %p75_p4 = scmp.ne.s32.totalorder %s961_s10, %s957_s9 }
   0x8   : > { %p1035_p3 = por %p70_p2, %p69_p1  ;;  %s59_s19 = ssub.s32 %s973_s13, %s1170_s16 }
   0x9   : > { %p76_p5 = scmp.eq.s32.totalorder %s806_s15, 0  ;;  %p60_p6 = scmp.eq.s32.totalorder %s59_s19, 0 }
   0xa   : > { %p846_p8 = scmp.lt.s32.totalorder %s977_s14, 2  ;;  %s140_s22 = sand.u32 1, %s965_s11  }
   0xb   : > { %p1042_p7 = por %p76_p5, %p75_p4  ;;  %s829_s23 = sshll.u32 %s973_s13, 10 }
   0xc   : > { %s1048_s21 = scalar_select %p60_p6, %s965_s11, %s62_s17  }
   0xd   : > { %s810_s24 = sshll.u32 %s140_s22, 6  ;;  %s150_s27 = scalar_lea.hbm %s1159_s1, %s829_s23 }
   0xe   : > { %s144_s28 = scalar_lea.vmem [#allocation2], %s810_s24  ;;  %p1057_p9 = pnand %p846_p8, %p1035_p3 }
   0xf   : > { %s151_s29 = sshll.u32 %s144_s28, 4  ;;  %s141_s3 = scalar_lea.sflag [#allocation3], %s140_s22  ;;  %s152_s29 = int_to_ptr.vmem [resolvable:$true] %s151_s29 }
  0x10   : > { %p901_p10 = pneg %p1057_p9  ;;  %s912_s4 = scalar_lea.vmem %s152_s29, 1024 }
  0x11   : > { %p913_p11 = scmp.ne.s32.totalorder %s152_s29, %s912_s4  ;;  %s979_s5 = smov [#allocation2]  }
  0x12   : > { %s917_s6 = sshll.u32 %s979_s5, 4  ;;  %s918_s6 = int_to_ptr.vmem [resolvable:$false] %s917_s6 }
  0x13   : > { %p915_p12 = pnand %p913_p11, %p901_p10  ;;  %s919_s7 = scalar_lea.vmem %s918_s6, 2048 }
  0x14   : > { %p920_p0 = scmp.lt.s32.totalorder %s152_s29, %s918_s6  ;;  %p921_p1 = scmp.lt.s32.totalorder %s919_s7, %s912_s4 }
  0x15   : > { %p916_p13 = pneg %p915_p12 }
  0x16   : > { %p922_p2 = por %p921_p1, %p920_p0 }
  0x18   : > { %p923_p3 = pnand %p922_p2, %p916_p13 }
  0x1a   : > { %926 = shalt.err (!%p923_p3)
}
  0x1b   : > { %s980_s8 = smov 128   ;;  %s981_s9 = smov 8  }
  0x1c   : > { %845 = dma.hbm_to_vmem [thread:$0]  (!%p1057_p9), %s150_s27, 1024, %s152_s29, %s141_s3, %s980_s8, %s980_s8, %s981_s9  }
  0x1d   : > { %p813_p4 = scmp.ge.s32.totalorder %s977_s14, 1  ;;  %p159_p5 = scmp.lt.s32.totalorder %s977_s14, 3 }
  0x1f   : > { %p160_p6 = pnand %p813_p4, %p159_p5 }
  0x20   : > { %s165_s15 = sand.u32 (!%p160_p6), 1, %s961_s10  }
  0x21   : > { %163 = sbr.rel (%p160_p6) target bundleno = 310 (0x136), region = 28  ;;  %s814_s17 = sshll.u32 (!%p160_p6), %s165_s15, 6 }
  0x22   : > { %s166_s18 = scalar_lea.sflag (!%p160_p6), [#allocation3], %s165_s15  ;;  %s1068_s19 = scalar_lea.vmem (!%p160_p6), [#allocation2], %s814_s17 }
  0x26   : > { %952 = dma.done.wait (%p1042_p7), %s166_s18, 1024  }
  0x27   : > { %954 = vsyncadd (%p1042_p7), %s166_s18, 4294966272  ;;  %p204_p8 = scmp.lt.s32.totalorder %s969_s12, 1  ;;  %v224_v0 = vlaneseq  ;;  %v982_v1 = vmov 1983009808   ;;  %v983_v3 = vmov 0.0   ;;  %v449_v58 = vld [vmem:[%s1068_s19] sm:$0xff] }
  0x28   : > { %v246_v2 = vunpack.c.l.s4 %v982_v1  ;;  %546 = vmatprep.mubr.f32.mxu0 %v983_v3  ;;  %570 = vmatprep.mubr.f32.mxu1 %v983_v3  ;;  %vm457_vm8 = vcmask 130048   ;;  %v453_v59 = vld [vmem:[%s1068_s19 + $0x20] sm:$0xff]  ;;  %v450_v60 = vld [vmem:[%s1068_s19 + $0x8] sm:$0xff]  ;;  %v451_v62 = vld [vmem:[%s1068_s19 + $0x10] sm:$0xff] }
  0x29   : > { %v225_v4 = vand.u32 127, %v224_v0  ;;  %s1172_s12 = smov (!%p204_p8, %s969_s12), 1  ;;  %v1080_v5 = vshrl.u32 %v224_v0, 7  ;;  %v454_v61 = vld [vmem:[%s1068_s19 + $0x28] sm:$0xff]  ;;  %v455_v63 = vld [vmem:[%s1068_s19 + $0x30] sm:$0xff]  ;;  %v452_v0 = vld [vmem:[%s1068_s19 + $0x18] sm:$0xff] }
  0x2a   : > { %v247_v9 = vunpack.c.0.s8 %v246_v2  ;;  %s830_s20 = sshll.u32 %s1172_s12, 2  ;;  %v456_v1 = vld [vmem:[%s1068_s19 + $0x38] sm:$0xff]  ;;  %s831_s25 = sshll.u32 %s1172_s12, 3 }
  0x2b   : > { %v226_v6 = vadd.s32 128, %v225_v4  ;;  %v230_v7 = vshra.s32 %v225_v4, 4  ;;  %v234_v8 = vand.u32 15, %v225_v4  ;;  %s211_s24 = scalar_lea.vmem %s1158_s0, %s830_s20  ;;  %v277_v26 = vsub.s32 1, %v1080_v5  ;;  %s221_s28 = scalar_lea.vmem %s1160_s2, %s831_s25 }
  0x2c   : > { %v250_v16 = vsub.s32 %v247_v9, %v1080_v5  ;;  %v241_v21 = vld [vmem:[%s211_s24] sm:$0xf]  ;;  %v281_v27 = vsub.s32 3, %v1080_v5  ;;  %v1092_v37 = vadd.s32 8, %v1080_v5  ;;  %v368_v9 = vsub.s32 2, %v1080_v5 }
  0x2d   : > { %v231_v10 = vshra.s32 %v226_v6, 4  ;;  %v232_v11 = vcvt.s32.f32 %v230_v7  ;;  %v235_v12 = vand.u32 15, %v226_v6  ;;  %v236_v13 = vcvt.s32.f32 %v234_v8 }
  0x2e   : > { %v364_v8 = vsub.s32 0, %v1080_v5 }
  0x2f   : > { %v233_v14 = vcvt.s32.f32 %v231_v10  ;;  %v237_v15 = vcvt.s32.f32 %v235_v12 }
  0x31   : > { %v244_v17 = vcombine.low %v232_v11, %v233_v14  ;;  %v256_v18 = vcombine.low %v236_v13, %v237_v15 }
  0x33   : > { %v251_v19 = vrot.slane %v244_v17, %v250_v16  ;;  %v263_v20 = vrot.slane %v256_v18, %v250_v16 }
  0x35   : > { %v1087_v22 = vadd.f32 %v251_v19, %v241_v21  ;;  %v264_v23 = vrot.slane %v263_v20, 7 }
  0x37   : > { %v266_v24 = vadd.f32 %v264_v23, %v241_v21  ;;  %v267_v2 = vfloor.f32 %v1087_v22 }
  0x39   : > { %v268_v25 = vfloor.f32 %v266_v24  ;;  %v836_v4 = vtrunc.f32 %v267_v2  ;;  %v269_v10 = vsub.f32 %v1087_v22, %v267_v2 }
  0x3b   : > { %v270_v28 = vsub.f32 %v266_v24, %v268_v25  ;;  %v838_v29 = vtrunc.f32 %v268_v25  ;;  %v837_v6 = vcvt.f32.s32 %v836_v4  ;;  %v382_v13 = vsub.f32 1.0, %v269_v10 }
  0x3c   : > { %v407_v14 = vrot.slane %v269_v10, %v364_v8  ;;  %v411_v17 = vrot.slane %v269_v10, %v368_v9 }
  0x3d   : > { %v839_v30 = vcvt.f32.s32 %v838_v29  ;;  %v295_v31 = vsub.f32 1.0, %v270_v28  ;;  %v324_v32 = vrot.slane %v270_v28, %v281_v27  ;;  %v320_v33 = vrot.slane %v270_v28, %v277_v26 }
  0x3e   : > { %v273_v7 = vadd.s32 1, %v837_v6  ;;  %v369_v16 = vrot.slane %v837_v6, %v368_v9  ;;  %v430_v20 = vrot.slane %v382_v13, %v364_v8  ;;  %v417_v21 = vrot.slane %v407_v14, %v364_v8 }
  0x3f   : > { %v274_v34 = vadd.s32 1, %v839_v30  ;;  %v282_v35 = vrot.slane %v839_v30, %v281_v27  ;;  %v347_v36 = vrot.slane %v295_v31, %v281_v27  ;;  %v278_v38 = vrot.slane %v839_v30, %v277_v26 }
  0x40   : > { %v343_v39 = vrot.slane %v295_v31, %v277_v26  ;;  %v334_v43 = vrot.slane %v324_v32, %v277_v26  ;;  %v330_v45 = vrot.slane %v320_v33, %v277_v26  ;;  %v386_v11 = vrot.slane %v273_v7, %v364_v8 }
  0x41   : > { %v290_v40 = vrot.slane %v282_v35, %v277_v26  ;;  %v303_v41 = vrot.slane %v274_v34, %v281_v27  ;;  %v299_v42 = vrot.slane %v274_v34, %v277_v26  ;;  %v286_v44 = vrot.slane %v278_v38, %v277_v26 }
  0x42   : > { %v357_v47 = vrot.slane %v347_v36, %v277_v26  ;;  %v353_v49 = vrot.slane %v343_v39, %v277_v26  ;;  %v390_v12 = vrot.slane %v273_v7, %v368_v9  ;;  %v394_v15 = vrot.slane %v386_v11, %v364_v8 }
  0x43   : > { %v311_v46 = vrot.slane %v303_v41, %v277_v26  ;;  %v307_v48 = vrot.slane %v299_v42, %v277_v26  ;;  %vm294_vm0 = vcmp.eq.s32.totalorder %v1092_v37, %v290_v40  ;;  %vm293_vm1 = vcmp.eq.s32.totalorder %v1092_v37, %v286_v44 }
  0x44   : > { %vm292_vm2 = vcmp.eq.s32.totalorder %v1080_v5, %v290_v40  ;;  %vm291_vm3 = vcmp.eq.s32.totalorder %v1080_v5, %v286_v44  ;;  %v398_v18 = vrot.slane %v390_v12, %v364_v8  ;;  %v434_v23 = vrot.slane %v382_v13, %v368_v9 }
  0x45   : > { %vm315_vm4 = vcmp.eq.s32.totalorder %v1092_v37, %v311_v46  ;;  %vm314_vm5 = vcmp.eq.s32.totalorder %v1092_v37, %v307_v48  ;;  %vm313_vm6 = vcmp.eq.s32.totalorder %v1080_v5, %v311_v46  ;;  %vm312_vm7 = vcmp.eq.s32.totalorder %v1080_v5, %v307_v48 }
  0x46   : > { %v338_v50 = vsel %vm315_vm4, %v334_v43, 0.0  ;;  %v337_v51 = vsel %vm314_vm5, %v330_v45, 0.0  ;;  %v336_v52 = vsel %vm313_vm6, %v334_v43, 0.0  ;;  %v335_v53 = vsel %vm312_vm7, %v330_v45, 0.0 }
  0x47   : > { %v361_v54 = vsel %vm294_vm0, %v357_v47, %v338_v50  ;;  %v360_v55 = vsel %vm293_vm1, %v353_v49, %v337_v51  ;;  %v359_v56 = vsel %vm292_vm2, %v357_v47, %v336_v52  ;;  %v358_v57 = vsel %vm291_vm3, %v353_v49, %v335_v53 }
  0x48   : > { %510 = vmatprep.subr.mxu0 %v361_v54  ;;  %832 = vmatprep.subr.mxu1 %v361_v54  ;;  %vm399_vm9 = vcmp.eq.s32.totalorder %v1080_v5, %v394_v15  ;;  %v377_v24 = vrot.slane %v369_v16, %v364_v8  ;;  %v421_v25 = vrot.slane %v411_v17, %v364_v8  ;;  %vm680_vm1 = vcmask 1041409  }
  0x49   : > { %511 = vmatpush1.msra.mxu0 %v360_v55  ;;  %834 = vmatpush1.msra.mxu1 %v360_v55  ;;  %vm401_vm10 = vcmp.eq.s32.totalorder %v1092_v37, %v394_v15  ;;  %vm400_vm11 = vcmp.eq.s32.totalorder %v1080_v5, %v398_v18  ;;  %v440_v22 = vrot.slane %v430_v20, %v364_v8  ;;  %v422_v26 = vsel %vm399_vm9, %v417_v21, 0.0 }
  0x4a   : > { %512 = vmatprep.subr.mxu0 %v359_v56  ;;  %833 = vmatprep.subr.mxu1 %v359_v56  ;;  %vm402_vm13 = vcmp.eq.s32.totalorder %v1092_v37, %v398_v18  ;;  %v444_v27 = vrot.slane %v434_v23, %v364_v8  ;;  %v424_v28 = vsel %vm401_vm10, %v417_v21, 0.0  ;;  %vm379_vm15 = vcmp.eq.s32.totalorder %v1080_v5, %v377_v24 }
  0x4b   : > { %513 = vmatpush1.msra.mxu0 %v358_v57  ;;  %835 = vmatpush1.msra.mxu1 %v358_v57  ;;  %v423_v31 = vsel %vm400_vm11, %v421_v25, 0.0  ;;  %vm381_vm0 = vcmp.eq.s32.totalorder %v1092_v37, %v377_v24  ;;  %v425_v32 = vsel %vm402_vm13, %v421_v25, 0.0  ;;  %vm682_vm2 = vcmask 1045509  }
  0x4c   : > { %819 = vmatmul.mubr.msk.f32.vlgmr.msra.gmra.mxu0 %vm457_vm8, %v449_v58  ;;  %823 = vmatmul.mubr.msk.f32.vlgmr.msra.gmra.mxu1 %vm457_vm8, %v453_v59  ;;  %v446_v39 = vsel %vm379_vm15, %v444_v27, %v423_v31  ;;  %v448_v42 = vsel %vm381_vm0, %v444_v27, %v425_v32  ;;  %vm685_vm3 = vcmask 1042434   ;;  %vm687_vm4 = vcmask 1046534  }
  0x4d   : > { %552 = vmatprep.mubr.f32.mxu0 %v983_v3  ;;  %576 = vmatprep.mubr.f32.mxu1 %v983_v3  ;;  %vm690_vm5 = vcmask 1043459   ;;  %vm692_vm6 = vcmask 1047559  }
  0x50   : > { %820 = vmatmul.mubr.msk.f32.gmra.mxu0 %vm457_vm8, %v450_v60  ;;  %824 = vmatmul.mubr.msk.f32.gmra.mxu1 %vm457_vm8, %v454_v61 }
  0x51   : > { %558 = vmatprep.mubr.f32.mxu0 %v983_v3  ;;  %582 = vmatprep.mubr.f32.mxu1 %v983_v3 }
  0x54   : > { %821 = vmatmul.mubr.msk.f32.gmra.mxu0 %vm457_vm8, %v451_v62  ;;  %825 = vmatmul.mubr.msk.f32.gmra.mxu1 %vm457_vm8, %v455_v63 }
  0x55   : > { %564 = vmatprep.mubr.f32.mxu0 %v983_v3  ;;  %588 = vmatprep.mubr.f32.mxu1 %v983_v3  ;;  %v365_v3 = vrot.slane %v837_v6, %v364_v8 }
  0x57   : > { %v373_v19 = vrot.slane %v365_v3, %v364_v8 }
  0x58   : > { %822 = vmatmul.mubr.msk.f32.gmra.mxu0 %vm457_vm8, %v452_v0  ;;  %826 = vmatmul.mubr.msk.f32.gmra.mxu1 %vm457_vm8, %v456_v1 }
  0x59   : > { %vm378_vm12 = vcmp.eq.s32.totalorder %v1080_v5, %v373_v19  ;;  %vm380_vm14 = vcmp.eq.s32.totalorder %v1092_v37, %v373_v19 }
  0x5a   : > { %v445_v33 = vsel %vm378_vm12, %v440_v22, %v422_v26  ;;  %v447_v36 = vsel %vm380_vm14, %v440_v22, %v424_v28 }
 0x10c   : > { %v548_v29 = vpop.f32.mrf.mxu0  ;;  %v572_v30 = vpop.f32.mrf.mxu1 }
 0x10d   : > { %v603_v38 = vmul.f32 %v572_v30, %v445_v33  ;;  %v595_v43 = vmul.f32 %v548_v29, %v445_v33 }
 0x10e   : > { %v550_v34 = vpop.f32.mrf.mxu0  ;;  %v574_v35 = vpop.f32.mrf.mxu1 }
 0x10f   : > { %v596_v46 = vmul.f32 %v550_v34, %v446_v39  ;;  %v604_v47 = vmul.f32 %v574_v35, %v446_v39 }
 0x110   : > { %v554_v40 = vpop.f32.mrf.mxu0  ;;  %v578_v41 = vpop.f32.mrf.mxu1 }
 0x111   : > { %v597_v44 = vmul.f32 %v554_v40, %v447_v36  ;;  %v605_v45 = vmul.f32 %v578_v41, %v447_v36 }
 0x112   : > { %v556_v48 = vpop.f32.mrf.mxu0  ;;  %v580_v5 = vpop.f32.mrf.mxu1 }
 0x113   : > { %v611_v49 = vadd.f32 %v597_v44, %v595_v43  ;;  %v639_v50 = vadd.f32 %v605_v45, %v603_v38  ;;  %v598_v37 = vmul.f32 %v556_v48, %v448_v42  ;;  %v606_v51 = vmul.f32 %v580_v5, %v448_v42 }
 0x114   : > { %v560_v52 = vpop.f32.mrf.mxu0  ;;  %v584_v53 = vpop.f32.mrf.mxu1 }
 0x115   : > { %v640_v54 = vrot.slane %v639_v50, 4  ;;  %v618_v55 = vadd.f32 %v598_v37, %v596_v46  ;;  %v646_v56 = vadd.f32 %v606_v51, %v604_v47  ;;  %v612_v59 = vrot.slane %v611_v49, 4 }
 0x116   : > { %v562_v57 = vpop.f32.mrf.mxu0  ;;  %v586_v58 = vpop.f32.mrf.mxu1  ;;  %v607_v62 = vmul.f32 %v584_v53, %v445_v33  ;;  %v599_v6 = vmul.f32 %v560_v52, %v445_v33 }
 0x117   : > { %v619_v60 = vrot.slane %v618_v55, 4  ;;  %v647_v61 = vrot.slane %v646_v56, 4  ;;  %v641_v1 = vadd.f32 %v640_v54, %v639_v50  ;;  %v613_v11 = vadd.f32 %v612_v59, %v611_v49 }
 0x118   : > { %v566_v63 = vpop.f32.mrf.mxu0  ;;  %v590_v0 = vpop.f32.mrf.mxu1  ;;  %v600_v3 = vmul.f32 %v562_v57, %v446_v39  ;;  %v608_v13 = vmul.f32 %v586_v58, %v446_v39 }
 0x119   : > { %v620_v2 = vadd.f32 %v619_v60, %v618_v55  ;;  %v648_v4 = vadd.f32 %v647_v61, %v646_v56  ;;  %v601_v7 = vmul.f32 %v566_v63, %v447_v36  ;;  %v609_v8 = vmul.f32 %v590_v0, %v447_v36 }
 0x11a   : > { %v568_v9 = vpop.f32.mrf.mxu0  ;;  %v592_v10 = vpop.f32.mrf.mxu1  ;;  %v642_v18 = vrot.slane %v641_v1, 2  ;;  %v614_v25 = vrot.slane %v613_v11, 2 }
 0x11b   : > { %v649_v12 = vrot.slane %v648_v4, 2  ;;  %v625_v14 = vadd.f32 %v601_v7, %v599_v6  ;;  %v653_v15 = vadd.f32 %v609_v8, %v607_v62  ;;  %v602_v16 = vmul.f32 %v568_v9, %v448_v42 }
 0x11c   : > { %v610_v17 = vmul.f32 %v592_v10, %v448_v42  ;;  %v621_v19 = vrot.slane %v620_v2, 2  ;;  %v643_v30 = vadd.f32 %v642_v18, %v641_v1  ;;  %v615_v36 = vadd.f32 %v614_v25, %v613_v11 }
 0x11d   : > { %v626_v20 = vrot.slane %v625_v14, 4  ;;  %v654_v21 = vrot.slane %v653_v15, 4  ;;  %v632_v23 = vadd.f32 %v602_v16, %v600_v3  ;;  %v650_v22 = vadd.f32 %v649_v12, %v648_v4 }
 0x11e   : > { %v660_v24 = vadd.f32 %v610_v17, %v608_v13  ;;  %v622_v31 = vadd.f32 %v621_v19, %v620_v2  ;;  %v644_v43 = vrot.slane %v643_v30, 1  ;;  %v616_v48 = vrot.slane %v615_v36, 1 }
 0x11f   : > { %v627_v26 = vadd.f32 %v626_v20, %v625_v14  ;;  %v655_v27 = vadd.f32 %v654_v21, %v653_v15  ;;  %v633_v28 = vrot.slane %v632_v23, 4  ;;  %v651_v38 = vrot.slane %v650_v22, 1 }
 0x120   : > { %v661_v29 = vrot.slane %v660_v24, 4  ;;  %v623_v44 = vrot.slane %v622_v31, 1  ;;  %v645_v51 = vadd.f32 %v644_v43, %v643_v30  ;;  %v617_v56 = vadd.f32 %v616_v48, %v615_v36 }
 0x121   : > { %v628_v32 = vrot.slane %v627_v26, 2  ;;  %v656_v33 = vrot.slane %v655_v27, 2  ;;  %v634_v34 = vadd.f32 %v633_v28, %v632_v23  ;;  %v652_v5 = vadd.f32 %v651_v38, %v650_v22 }
 0x122   : > { %v662_v35 = vadd.f32 %v661_v29, %v660_v24  ;;  %v624_v52 = vadd.f32 %v623_v44, %v622_v31 }
 0x123   : > { %v629_v39 = vadd.f32 %v628_v32, %v627_v26  ;;  %v657_v40 = vadd.f32 %v656_v33, %v655_v27  ;;  %v635_v41 = vrot.slane %v634_v34, 2  ;;  %v677_v57 = vcombine.low %v645_v51, %v652_v5 }
 0x124   : > { %v663_v42 = vrot.slane %v662_v35, 2  ;;  %v675_v60 = vcombine.low %v617_v56, %v624_v52 }
 0x125   : > { %v630_v45 = vrot.slane %v629_v39, 1  ;;  %v636_v46 = vadd.f32 %v635_v41, %v634_v34  ;;  %v658_v49 = vrot.slane %v657_v40, 1  ;;  %v684_v63 = vrot.slane %v677_v57, 6 }
 0x126   : > { %v664_v47 = vadd.f32 %v663_v42, %v662_v35 }
 0x127   : > { %v637_v50 = vrot.slane %v636_v46, 1  ;;  %v631_v53 = vadd.f32 %v630_v45, %v629_v39  ;;  %v659_v58 = vadd.f32 %v658_v49, %v657_v40 }
 0x128   : > { %v665_v37 = vrot.slane %v664_v47, 1 }
 0x129   : > { %v638_v54 = vadd.f32 %v637_v50, %v636_v46 }
 0x12a   : > { %v666_v55 = vadd.f32 %v665_v37, %v664_v47 }
 0x12b   : > { %v676_v59 = vcombine.low %v631_v53, %v638_v54 }
 0x12c   : > { %v678_v62 = vcombine.low %v659_v58, %v666_v55 }
 0x12d   : > { %v679_v61 = vrot.slane %v676_v59, 7 }
 0x12e   : > { %v689_v4 = vrot.slane %v678_v62, 5 }
 0x12f   : > { %v681_v0 = vsel %vm680_vm1, %v679_v61, %v675_v60 }
 0x130   : > { %v683_v1 = vsel %vm682_vm2, %v679_v61, %v681_v0 }
 0x131   : > { %v686_v2 = vsel %vm685_vm3, %v684_v63, %v683_v1 }
 0x132   : > { %v688_v6 = vsel %vm687_vm4, %v684_v63, %v686_v2 }
 0x133   : > { %v691_v7 = vsel %vm690_vm5, %v689_v4, %v688_v6 }
 0x134   : > { %v693_v8 = vsel %vm692_vm6, %v689_v4, %v691_v7 }
 0x135   : > { %695 = vst [vmem:[%s221_s28] sm:$0xff] %v693_v8 }
 0x136 PF: > { %s15_s14 = sadd.s32 1, %s977_s14   ;;  %s1164_s9 = smov %s961_s10 }
 0x137   : > { %p12_p7 = scmp.ge.s32.totalorder %s15_s14, 4   ;;  %s1165_s10 = smov %s965_s11 }
 0x138   : > { %s1166_s11 = smov %s1048_s21  ;;  %s1167_s12 = smov %s973_s13 }
 0x139   : > { %s1168_s13 = smov %s1170_s16  ;;  %14 = sbr.rel (!%p12_p7) target bundleno = 4 (0x4), region = 71 }
 0x13e   :  { %726 = vsyncpa [#allocation3], 1 }
 0x13f   :  { %728 = vsyncpa [#allocation3 + $0x1], 1 }

</bundles_post_ra>
